<compile_context>
chip_gen: v7x
topology: tpu7x:2x2x1
jax: 0.10.0
libtpu: 0.0.40
codegen_flags: <defaults>
</compile_context>

<pallas_src>
import functools
import math

import jax
import jax.numpy as jnp
from jax.experimental import pallas as pl
from jax.experimental.pallas import tpu as pltpu


# ----------------------------------------------------------------------------
# Fused depthwise(3x3, stride 2, pad 1, groups=C) + pointwise(1x1) kernel
# ----------------------------------------------------------------------------
def _fused_dw_pw_kernel(x_ref, w_ref, b_ref, o_ref, *, Ho, Wo):
    """One batch block per grid step.

    x_ref : (bb, Hh, Wh, 4*C)  bf16  phase-packed padded input:
                                     x_ref[b,i,j,(p*2+q)*C+c] = x_pad[b, 2i+p, 2j+q, c]
    w_ref : (4, 4*C, Cout)     bf16  depthwise-folded-into-pointwise weights, one slab
                                     per spatial tap group (dh,dw); unused phases are 0.
    b_ref : (1, Cout)          f32   b_pw + W_pw @ b_dw  (depthwise bias folded at init)
    o_ref : (bb, Ho*Wo, Cout)  bf16  lane-dense output block
    """
    bb, _, cout = o_ref.shape
    c4 = x_ref.shape[-1]
    m = bb * Ho * Wo
    acc = jnp.zeros((m, cout), jnp.float32)
    # Statically unrolled over the 4 spatial tap groups; each group is a single
    # K = 4*C bf16 MXU matmul with f32 accumulation.
    for s, (dh, dw) in enumerate(((0, 0), (0, 1), (1, 0), (1, 1))):
        a = x_ref[:, dh:dh + Ho, dw:dw + Wo, :].reshape(m, c4)
        acc = acc + jnp.dot(a, w_ref[s], preferred_element_type=jnp.float32)
    o_ref[...] = (acc + b_ref[...]).reshape(bb, Ho * Wo, cout).astype(o_ref.dtype)


def _choose_batch_block(B, Ho, Wo, target_rows=256):
    """Largest divisor of B with bb*Ho*Wo ~ target_rows, keeping >=2 grid steps if possible."""
    want = max(1, target_rows // max(1, Ho * Wo))
    bb = 1
    for d in range(1, min(B, want) + 1):
        if B % d == 0:
            bb = d
    if B >= 2 and B // bb < 2:          # v7x: 2 TensorCores -> keep the grid >= 2 long
        for d in range(bb, 0, -1):
            if B % d == 0 and B // d >= 2:
                bb = d
                break
    return bb


def depthwise_conv2d_pallas(x, kp, *, dim_in, dim_out, kernel_size=3, padding=1, stride=2):
    """x: (B, dim_in, H, W) NCHW float32 -> (B, dim_out, H//2, W//2) float32."""
    assert kernel_size == 3 and stride == 2 and padding == 1, (
        "kernel specialized to the PiT pooling config (3x3, stride 2, pad 1)")
    # TODO(synk): generalize the phase packing / tap grouping to other kernel/stride/padding.
    B, C, H, W = x.shape
    assert C == dim_in
    Ho = (H + 2 * padding - kernel_size) // stride + 1
    Wo = (W + 2 * padding - kernel_size) // stride + 1

    # ---- host glue: one bf16 pass over the activation (NCHW->NHWC, pad, phase-pack) ----
    xh = jnp.transpose(x, (0, 2, 3, 1)).astype(jnp.bfloat16)   # cast early: half the bytes
    Hp, Wp = H + 2 * padding, W + 2 * padding
    ph, pw = Hp % 2, Wp % 2                                    # keep row/col phases equal-sized
    xp = jnp.pad(xh, ((0, 0), (padding, padding + ph), (padding, padding + pw), (0, 0)))
    Hh, Wh = (Hp + ph) // 2, (Wp + pw) // 2
    assert Hh >= Ho + 1 and Wh >= Wo + 1
    # pack the 4 stride-2 phases channel-wise: x_pk[b,i,j,(p*2+q)*C+c] = x_pad[b,2i+p,2j+q,c]
    x_pk = xp.reshape(B, Hh, 2, Wh, 2, C).transpose(0, 1, 3, 2, 4, 5).reshape(B, Hh, Wh, 4 * C)

    bb = _choose_batch_block(B, Ho, Wo)
    grid = (B // bb,)

    # per-step VMEM estimate (double-buffered in/out + weights + relayout/f32-acc scratch)
    block_in = bb * Hh * Wh * 4 * C * 2
    block_out = bb * Ho * Wo * dim_out * 2
    w_bytes = 4 * 4 * C * dim_out * 2 + dim_out * 4
    scratch = bb * Ho * Wo * (4 * C * 2 + dim_out * 4) * 2
    need = 2 * (block_in + block_out) + 2 * w_bytes + scratch
    vmem_limit = int(min(max(2 * need, 32 << 20), 64 << 20))
    # TODO(synk): add a spatial (output-row) grid axis for large images so the per-step
    # block stays comfortably under v7x's 64 MiB VMEM instead of relying on the limit.

    out = pl.pallas_call(
        functools.partial(_fused_dw_pw_kernel, Ho=Ho, Wo=Wo),
        grid=grid,
        in_specs=[pl.BlockSpec((bb, Hh, Wh, 4 * C), lambda g: (g, 0, 0, 0)),
                  pl.BlockSpec((4, 4 * C, dim_out), lambda g: (0, 0, 0)),
                  pl.BlockSpec((1, dim_out), lambda g: (0, 0))],
        out_specs=pl.BlockSpec((bb, Ho * Wo, dim_out), lambda g: (g, 0, 0)),
        out_shape=jax.ShapeDtypeStruct((B, Ho * Wo, dim_out), jnp.bfloat16),
        compiler_params=pltpu.CompilerParams(dimension_semantics=("parallel",),
                                             vmem_limit_bytes=vmem_limit),
    )(x_pk, kp["w"], kp["b"])

    # `out` is already the PiT token layout (B, Ho*Wo, Cout); we keep the module's NCHW
    # float32 contract here (a transformer consumer could take `out` directly and skip
    # this extra HBM pass).
    return jnp.transpose(out.reshape(B, Ho, Wo, dim_out), (0, 3, 1, 2)).astype(x.dtype)


# ----------------------------------------------------------------------------
# One-time weight reformatting (PyTorch layout -> kernel layout)
# ----------------------------------------------------------------------------
def prepare_params(w_dw, b_dw, w_pw, b_pw, dim_in, dim_out):
    C, mult = dim_in, dim_out // dim_in
    assert dim_out == mult * dim_in
    # pointwise weight (Cout, Cout, 1, 1) -> [n, i] with i = c*mult + j
    wpm = w_pw.reshape(dim_out, dim_out).astype(jnp.float32)
    wp_cjn = wpm.T.reshape(C, mult, dim_out)                    # [c, j, n]
    # depthwise weight (Cout, 1, 3, 3): output channel o = c*mult + j uses input channel c
    wd = w_dw.reshape(C, mult, 3, 3).astype(jnp.float32)        # [c, j, kh, kw]
    # Fold depthwise through the 1x1 conv (in f32): W_fused[kh,kw,c,n] = sum_j wd*wp
    w_fused = jnp.einsum('cjhw,cjn->hwcn', wd, wp_cjn)          # (3, 3, C, Cout)
    # Group taps by spatial offset (dh, dw) = (kh//2, kw//2); within a group, place each
    # tap at the channel offset of its stride-2 phase (p, q) = (kh%2, kw%2). Phases a
    # group never touches keep zero columns (cheap: MXU has huge slack at these shapes).
    w_grp = jnp.zeros((2, 2, 2, 2, C, dim_out), jnp.float32)    # [dh, dw, p, q, c, n]
    for kh in range(3):
        for kw in range(3):
            w_grp = w_grp.at[kh // 2, kw // 2, kh % 2, kw % 2].set(w_fused[kh, kw])
    w_grp = w_grp.reshape(4, 4 * C, dim_out).astype(jnp.bfloat16)
    # fold the depthwise bias through the 1x1 conv: b_eff = b_pw + W_pw @ b_dw
    b_eff = (b_pw.astype(jnp.float32) + wpm @ b_dw.astype(jnp.float32)).reshape(1, dim_out)
    return {"w": w_grp, "b": b_eff}


def init_params(key, dim_in, dim_out, kernel_size=3):
    k1, k2, k3, k4 = jax.random.split(key, 4)
    w_dw = jax.random.normal(k1, (dim_out, 1, kernel_size, kernel_size),
                             jnp.float32) / math.sqrt(kernel_size * kernel_size)
    b_dw = 0.1 * jax.random.normal(k2, (dim_out,), jnp.float32)
    w_pw = jax.random.normal(k3, (dim_out, dim_out, 1, 1), jnp.float32) / math.sqrt(dim_out)
    b_pw = 0.1 * jax.random.normal(k4, (dim_out,), jnp.float32)
    return w_dw, b_dw, w_pw, b_pw


def reference_forward(x, w_dw, b_dw, w_pw, b_pw, *, stride, padding, groups):
    """Pure-XLA reference with PyTorch Conv2d semantics (f32)."""
    dn = ("NCHW", "OIHW", "NCHW")
    y = jax.lax.conv_general_dilated(
        x, w_dw, window_strides=(stride, stride),
        padding=((padding, padding), (padding, padding)),
        dimension_numbers=dn, feature_group_count=groups)
    y = y + b_dw[None, :, None, None]
    y = jax.lax.conv_general_dilated(
        y, w_pw, window_strides=(1, 1), padding=((0, 0), (0, 0)),
        dimension_numbers=dn)
    return y + b_pw[None, :, None, None]


# ----------------------------------------------------------------------------
if __name__ == "__main__":
    B, img_size = 2, 16
    dim_in, dim_out = 64, 128          # PiT pooling stage doubles the channel dim

    key = jax.random.PRNGKey(0)
    kx, kw = jax.random.split(key)
    x = jax.random.normal(kx, (B, dim_in, img_size, img_size), jnp.float32)
    w_dw, b_dw, w_pw, b_pw = init_params(kw, dim_in, dim_out)
    kp = prepare_params(w_dw, b_dw, w_pw, b_pw, dim_in, dim_out)

    fwd = jax.jit(functools.partial(depthwise_conv2d_pallas, dim_in=dim_in, dim_out=dim_out))
    out = fwd(x, kp)
    jax.block_until_ready(out)
    assert out.shape == (B, dim_out, img_size // 2, img_size // 2), out.shape

    ref = reference_forward(x, w_dw, b_dw, w_pw, b_pw, stride=2, padding=1, groups=dim_in)
    # bf16 activations/weights/output limit precision to ~1e-2 relative (inference-grade).
    rel = float(jnp.max(jnp.abs(out - ref)) / (jnp.max(jnp.abs(ref)) + 1e-6))
    assert rel < 5e-2, f"mismatch vs XLA reference: rel={rel}"
    print("KERNEL_OK")
</pallas_src>

<mosaic_0001>
module attributes {stable_mosaic.version = 11 : i64} {
  func.func @_fused_dw_pw_kernel(%arg0: i32, %arg1: memref<1x9x9x256xbf16, #tpu.memory_space<vmem>>, %arg2: memref<4x256x128xbf16, #tpu.memory_space<vmem>>, %arg3: memref<1x128xf32, #tpu.memory_space<vmem>>, %arg4: memref<1x64x128xbf16, #tpu.memory_space<vmem>>) attributes {dimension_semantics = [#tpu.dimension_semantics<parallel>], iteration_bounds = array<i64: 2>, scalar_prefetch = 0 : i64, scratch_operands = 0 : i64, tpu.core_type = #tpu.core_type<tc>, window_params = [{transform_indices = @transform_0, window_bounds = array<i64: 1, 9, 9, 256>}, {pipeline_mode = #tpu.pipeline_mode<synchronous>, transform_indices = @transform_1, window_bounds = array<i64: 4, 256, 128>}, {pipeline_mode = #tpu.pipeline_mode<synchronous>, transform_indices = @transform_2, window_bounds = array<i64: 1, 128>}, {transform_indices = @transform_3, window_bounds = array<i64: 1, 64, 128>}]} {
    %cst = arith.constant 0.000000e+00 : f32
    %0 = vector.broadcast %cst : f32 to vector<64x128xf32>
    %c0 = arith.constant 0 : index
    %c0_0 = arith.constant 0 : index
    %c0_1 = arith.constant 0 : index
    %c0_2 = arith.constant 0 : index
    %1 = vector.load %arg1[%c0, %c0_0, %c0_1, %c0_2] : memref<1x9x9x256xbf16, #tpu.memory_space<vmem>>, vector<1x8x8x256xbf16>
    %2 = vector.shape_cast %1 : vector<1x8x8x256xbf16> to vector<64x256xbf16>
    %c0_3 = arith.constant 0 : index
    %c0_4 = arith.constant 0 : index
    %c0_5 = arith.constant 0 : index
    %3 = vector.load %arg2[%c0_3, %c0_4, %c0_5] : memref<4x256x128xbf16, #tpu.memory_space<vmem>>, vector<1x256x128xbf16>
    %4 = vector.shape_cast %3 : vector<1x256x128xbf16> to vector<256x128xbf16>
    %cst_6 = arith.constant dense<0.000000e+00> : vector<64x128xf32>
    %5 = tpu.matmul %2, %4, %cst_6 {dimension_numbers = #tpu.dot_dimension_numbers<[1], [0], [0], [1], [0, 0, 1, 1], [], []>} : vector<64x256xbf16>, vector<256x128xbf16>, vector<64x128xf32> -> vector<64x128xf32>
    %6 = arith.addf %0, %5 : vector<64x128xf32>
    %c0_7 = arith.constant 0 : index
    %c0_8 = arith.constant 0 : index
    %c1 = arith.constant 1 : index
    %c0_9 = arith.constant 0 : index
    %7 = vector.load %arg1[%c0_7, %c0_8, %c1, %c0_9] : memref<1x9x9x256xbf16, #tpu.memory_space<vmem>>, vector<1x8x8x256xbf16>
    %8 = vector.shape_cast %7 : vector<1x8x8x256xbf16> to vector<64x256xbf16>
    %c1_10 = arith.constant 1 : index
    %c0_11 = arith.constant 0 : index
    %c0_12 = arith.constant 0 : index
    %9 = vector.load %arg2[%c1_10, %c0_11, %c0_12] : memref<4x256x128xbf16, #tpu.memory_space<vmem>>, vector<1x256x128xbf16>
    %10 = vector.shape_cast %9 : vector<1x256x128xbf16> to vector<256x128xbf16>
    %cst_13 = arith.constant dense<0.000000e+00> : vector<64x128xf32>
    %11 = tpu.matmul %8, %10, %cst_13 {dimension_numbers = #tpu.dot_dimension_numbers<[1], [0], [0], [1], [0, 0, 1, 1], [], []>} : vector<64x256xbf16>, vector<256x128xbf16>, vector<64x128xf32> -> vector<64x128xf32>
    %12 = arith.addf %6, %11 : vector<64x128xf32>
    %c0_14 = arith.constant 0 : index
    %c1_15 = arith.constant 1 : index
    %c0_16 = arith.constant 0 : index
    %c0_17 = arith.constant 0 : index
    %13 = vector.load %arg1[%c0_14, %c1_15, %c0_16, %c0_17] : memref<1x9x9x256xbf16, #tpu.memory_space<vmem>>, vector<1x8x8x256xbf16>
    %14 = vector.shape_cast %13 : vector<1x8x8x256xbf16> to vector<64x256xbf16>
    %c2 = arith.constant 2 : index
    %c0_18 = arith.constant 0 : index
    %c0_19 = arith.constant 0 : index
    %15 = vector.load %arg2[%c2, %c0_18, %c0_19] : memref<4x256x128xbf16, #tpu.memory_space<vmem>>, vector<1x256x128xbf16>
    %16 = vector.shape_cast %15 : vector<1x256x128xbf16> to vector<256x128xbf16>
    %cst_20 = arith.constant dense<0.000000e+00> : vector<64x128xf32>
    %17 = tpu.matmul %14, %16, %cst_20 {dimension_numbers = #tpu.dot_dimension_numbers<[1], [0], [0], [1], [0, 0, 1, 1], [], []>} : vector<64x256xbf16>, vector<256x128xbf16>, vector<64x128xf32> -> vector<64x128xf32>
    %18 = arith.addf %12, %17 : vector<64x128xf32>
    %c0_21 = arith.constant 0 : index
    %c1_22 = arith.constant 1 : index
    %c1_23 = arith.constant 1 : index
    %c0_24 = arith.constant 0 : index
    %19 = vector.load %arg1[%c0_21, %c1_22, %c1_23, %c0_24] : memref<1x9x9x256xbf16, #tpu.memory_space<vmem>>, vector<1x8x8x256xbf16>
    %20 = vector.shape_cast %19 : vector<1x8x8x256xbf16> to vector<64x256xbf16>
    %c3 = arith.constant 3 : index
    %c0_25 = arith.constant 0 : index
    %c0_26 = arith.constant 0 : index
    %21 = vector.load %arg2[%c3, %c0_25, %c0_26] : memref<4x256x128xbf16, #tpu.memory_space<vmem>>, vector<1x256x128xbf16>
    %22 = vector.shape_cast %21 : vector<1x256x128xbf16> to vector<256x128xbf16>
    %cst_27 = arith.constant dense<0.000000e+00> : vector<64x128xf32>
    %23 = tpu.matmul %20, %22, %cst_27 {dimension_numbers = #tpu.dot_dimension_numbers<[1], [0], [0], [1], [0, 0, 1, 1], [], []>} : vector<64x256xbf16>, vector<256x128xbf16>, vector<64x128xf32> -> vector<64x128xf32>
    %24 = arith.addf %18, %23 : vector<64x128xf32>
    %c0_28 = arith.constant 0 : index
    %c0_29 = arith.constant 0 : index
    %25 = vector.load %arg3[%c0_28, %c0_29] : memref<1x128xf32, #tpu.memory_space<vmem>>, vector<1x128xf32>
    %26 = vector.broadcast %25 : vector<1x128xf32> to vector<64x128xf32>
    %27 = arith.addf %24, %26 : vector<64x128xf32>
    %28 = vector.shape_cast %27 : vector<64x128xf32> to vector<1x64x128xf32>
    %29 = arith.truncf %28 : vector<1x64x128xf32> to vector<1x64x128xbf16>
    %c0_30 = arith.constant 0 : index
    %c0_31 = arith.constant 0 : index
    %c0_32 = arith.constant 0 : index
    %30 = vector.load %arg4[%c0_30, %c0_31, %c0_32] : memref<1x64x128xbf16, #tpu.memory_space<vmem>>, vector<1x64x128xbf16>
    tpu.vector_store %arg4[%c0_30, %c0_31, %c0_32], %29 {strides = array<i32>} : memref<1x64x128xbf16, #tpu.memory_space<vmem>>, vector<1x64x128xbf16>,
    return
  }
  func.func @transform_0(%arg0: i32) -> (i32, i32, i32, i32) {
    %c0_i32 = arith.constant 0 : i32
    %c0_i32_0 = arith.constant 0 : i32
    %c0_i32_1 = arith.constant 0 : i32
    %c0_i32_2 = arith.constant 0 : i32
    return %arg0, %c0_i32, %c0_i32_0, %c0_i32_1 : i32, i32, i32, i32
  }
  func.func @transform_1(%arg0: i32) -> (i32, i32, i32) {
    %c0_i32 = arith.constant 0 : i32
    %c0_i32_0 = arith.constant 0 : i32
    %c0_i32_1 = arith.constant 0 : i32
    %c0_i32_2 = arith.constant 0 : i32
    return %c0_i32, %c0_i32_0, %c0_i32_1 : i32, i32, i32
  }
  func.func @transform_2(%arg0: i32) -> (i32, i32) {
    %c0_i32 = arith.constant 0 : i32
    %c0_i32_0 = arith.constant 0 : i32
    %c0_i32_1 = arith.constant 0 : i32
    return %c0_i32, %c0_i32_0 : i32, i32
  }
  func.func @transform_3(%arg0: i32) -> (i32, i32, i32) {
    %c0_i32 = arith.constant 0 : i32
    %c0_i32_0 = arith.constant 0 : i32
    %c0_i32_1 = arith.constant 0 : i32
    return %arg0, %c0_i32, %c0_i32_0 : i32, i32, i32
  }
}

</mosaic_0001>

<bundles_post_ra>
// kernel: depthwise_conv2d_pallas.1
= control target key start
LH: loop header
LB: loop body
LE: loop exit
PB: predicated region body
PF: predicated region fallthrough
CT: control target
= control target key end

     0   :  { %s2029_s12 = smov 0   ;;  %s2422_s0 = inlined_call_operand.vmem [shape: bf16[2,9,9,256], index: 0, kind: input, shape index: {}]   ;;  %s2423_s1 = inlined_call_operand.vmem [shape: bf16[4,256,128], index: 1, kind: input, shape index: {}]   ;;  %s2424_s2 = inlined_call_operand.vmem [shape: f32[1,128], index: 2, kind: input, shape index: {}]   ;;  %s2425_s3 = inlined_call_operand.vmem [shape: bf16[2,64,128], index: 3, kind: output, shape index: {}]  }
   0x1 LB: > { %s1485_s13 = sadd.s32 4294967295, %s2007_s12   ;;  %p1489_p0 = scmp.ge.s32.totalorder %s2007_s12, 1  ;;  %s2007_s12 = sphi %s2029_s12, %s13_s12  }
   0x2   : > { %p137_p1 = scmp.lt.s32.totalorder %s2007_s12, 3 }
   0x4   : > { %p138_p2 = pnand %p1489_p0, %p137_p1 }
   0x5   : > { %v1921_v0 = vld [vmem:[%s2423_s1 + $0xc0] sm:$0xff] (!%p138_p2)   ;;  %v1925_v4 = vld [vmem:[%s2423_s1 + $0xc8] sm:$0xff] (!%p138_p2)   ;;  %v1929_v8 = vld [vmem:[%s2423_s1 + $0xd0] sm:$0xff] (!%p138_p2)   ;;  %p161_p3 = scmp.lt.s32.totalorder (!%p138_p2), %s1485_s13, 1  ;;  %vm220_vm0 = vsmask.f32 (!%p138_p2), 3328 }
   0x6   : > { %141 = sbr.rel (%p138_p2) target bundleno = 321 (0x141), region = 32  ;;  %v1922_v1 = vld [vmem:[%s2423_s1 + $0x40] sm:$0xff] (!%p138_p2)   ;;  %1752 = vmatprep.subr.bf16.mxu0 (!%p138_p2), %v1921_v0  ;;  %v1926_v5 = vld [vmem:[%s2423_s1 + $0x48] sm:$0xff] (!%p138_p2)   ;;  %v1930_v9 = vld [vmem:[%s2423_s1 + $0x50] sm:$0xff] (!%p138_p2)   ;;  %vm221_vm1 = vsmask.f32 (!%p138_p2), 7440 }
   0x7   : > { %v1923_v2 = vld [vmem:[%s2423_s1 + $0x80] sm:$0xff] (!%p138_p2)   ;;  %1792 = vmatprep.subr.bf16.mxu1 (!%p138_p2), %v1922_v1  ;;  %v1927_v6 = vld [vmem:[%s2423_s1 + $0x88] sm:$0xff] (!%p138_p2)   ;;  %v1931_v10 = vld [vmem:[%s2423_s1 + $0x90] sm:$0xff] (!%p138_p2)  }
   0x8   : > { %v1924_v3 = vld [vmem:[%s2423_s1] sm:$0xff] (!%p138_p2)   ;;  %1753 = vmatpush3.bf16.msra.mxu0 (!%p138_p2), %v1923_v2  ;;  %v1928_v7 = vld [vmem:[%s2423_s1 + $0x8] sm:$0xff] (!%p138_p2)   ;;  %v1932_v11 = vld [vmem:[%s2423_s1 + $0x10] sm:$0xff] (!%p138_p2)  }
   0x9   : > { %1793 = vmatpush3.bf16.msra.mxu1 (!%p138_p2), %v1924_v3  ;;  %1754 = vmatprep.subr.bf16.mxu0 (!%p138_p2), %v1925_v4  ;;  %v1933_v12 = vld [vmem:[%s2423_s1 + $0xd8] sm:$0xff] (!%p138_p2)   ;;  %v1937_v16 = vld [vmem:[%s2423_s1 + $0xe0] sm:$0xff] (!%p138_p2)   ;;  %v1941_v20 = vld [vmem:[%s2423_s1 + $0xe8] sm:$0xff] (!%p138_p2)  }
   0xa   : > { %1794 = vmatprep.subr.bf16.mxu1 (!%p138_p2), %v1926_v5  ;;  %v1934_v13 = vld [vmem:[%s2423_s1 + $0x58] sm:$0xff] (!%p138_p2)   ;;  %v1938_v17 = vld [vmem:[%s2423_s1 + $0x60] sm:$0xff] (!%p138_p2)   ;;  %v1942_v21 = vld [vmem:[%s2423_s1 + $0x68] sm:$0xff] (!%p138_p2)  }
   0xb   : > { %v1935_v14 = vld [vmem:[%s2423_s1 + $0x98] sm:$0xff] (!%p138_p2)   ;;  %v1939_v18 = vld [vmem:[%s2423_s1 + $0xa0] sm:$0xff] (!%p138_p2)   ;;  %v1943_v22 = vld [vmem:[%s2423_s1 + $0xa8] sm:$0xff] (!%p138_p2)  }
   0xc   : > { %1755 = vmatpush3.bf16.msra.mxu0 (!%p138_p2), %v1927_v6  ;;  %v1936_v15 = vld [vmem:[%s2423_s1 + $0x18] sm:$0xff] (!%p138_p2)   ;;  %v1940_v19 = vld [vmem:[%s2423_s1 + $0x20] sm:$0xff] (!%p138_p2)   ;;  %v1944_v23 = vld [vmem:[%s2423_s1 + $0x28] sm:$0xff] (!%p138_p2)  }
   0xd   : > { %1795 = vmatpush3.bf16.msra.mxu1 %v1928_v7  ;;  %1756 = vmatprep.subr.bf16.mxu0 %v1929_v8  ;;  %s2429_s13 = smov (!%p161_p3, %s1485_s13), 1  ;;  %v1945_v24 = vld [vmem:[%s2423_s1 + $0xf0] sm:$0xff]   ;;  %v1949_v28 = vld [vmem:[%s2423_s1 + $0xf8] sm:$0xff]   ;;  %v1955_v46 = vld [vmem:[%s2423_s1 + $0x140] sm:$0xff]  }
   0xe   : > { %1796 = vmatprep.subr.bf16.mxu1 %v1930_v9  ;;  %v1946_v25 = vld [vmem:[%s2423_s1 + $0x70] sm:$0xff]   ;;  %s1912_s16 = smul.u32 144, %s2429_s13  ;;  %v1950_v29 = vld [vmem:[%s2423_s1 + $0x78] sm:$0xff]   ;;  %v1956_v47 = vld [vmem:[%s2423_s1 + $0x1c0] sm:$0xff]   ;;  %s1720_s24 = sshll.u32 %s2429_s13, 5 }
   0xf   : > { %v1947_v26 = vld [vmem:[%s2423_s1 + $0xb0] sm:$0xff]   ;;  %v1951_v30 = vld [vmem:[%s2423_s1 + $0xb8] sm:$0xff]   ;;  %vm2163_vm2 = vmor %vm220_vm0, %vm221_vm1  ;;  %s2403_s28 = scalar_lea.vmem %s2425_s3, %s1720_s24 }
  0x10   : > { %1757 = vmatpush3.bf16.msra.mxu0 %v1931_v10  ;;  %v1948_v27 = vld [vmem:[%s2423_s1 + $0x30] sm:$0xff]   ;;  %s2137_s27 = scalar_lea.vmem %s2422_s0, %s1912_s16  ;;  %v1952_v31 = vld [vmem:[%s2423_s1 + $0x38] sm:$0xff]   ;;  %v1958_v56 = vld [vmem:[%s2423_s1 + $0x180] sm:$0xff]  }
  0x11   : > { %1797 = vmatpush3.bf16.msra.mxu1 %v1932_v11  ;;  %1758 = vmatprep.subr.bf16.mxu0 %v1933_v12  ;;  %v172_v32 = vld [vmem:[%s2137_s27] sm:$0xff]  ;;  %v2147_v33 = vld [vmem:[%s2137_s27 + $0x10] sm:$0xff]  ;;  %v212_v34 = vld [vmem:[%s2137_s27 + $0x8] sm:$0x11] }
  0x12   : > { %1798 = vmatprep.subr.bf16.mxu1 %v1934_v13  ;;  %v213_v35 = vld [vmem:[%s2137_s27 + $0x18] sm:$0x11]  ;;  %v224_v36 = vshrl.u32 %v172_v32, 16  ;;  %v227_v37 = vshll.u32 %v172_v32, 16  ;;  %v1550_v38 = vcombine.high %v172_v32, %v2147_v33  ;;  %v233_v39 = vshll.u32 %v212_v34, 16  ;;  %v1957_v59 = vld [vmem:[%s2423_s1 + $0x100] sm:$0xff]  }
  0x13   : > { %v238_v40 = vshrl.u32 %v2147_v33, 16  ;;  %v241_v41 = vshll.u32 %v2147_v33, 16  ;;  %v247_v42 = vshll.u32 %v213_v35, 16  ;;  %v1549_v45 = vcombine.low %v172_v32, %v2147_v33  ;;  %v1960_v60 = vld [vmem:[%s2423_s1 + $0x1c8] sm:$0xff]   ;;  %v2190_v2 = vld [vmem:[%s2137_s27 + $0x20] sm:$0xff]  ;;  %v2193_v3 = vld [vmem:[%s2137_s27 + $0x30] sm:$0xff] }
  0x14   : > { %1759 = vmatpush3.bf16.msra.mxu0 %v1935_v14  ;;  %v226_v43 = vrot.slane %v224_v36, 4  ;;  %v229_v44 = vrot.slane %v227_v37, 5  ;;  %729 = vmatprep.mubr.bf16.mxu1 %v1550_v38  ;;  %v235_v48 = vrot.slane %v233_v39, 5  ;;  %v1959_v62 = vld [vmem:[%s2423_s1 + $0x148] sm:$0xff]   ;;  %v215_v5 = vld [vmem:[%s2137_s27 + $0x38] sm:$0x11]  ;;  %v1552_v8 = vcombine.high %v2190_v2, %v2193_v3 }
  0x15   : > { %1799 = vmatpush3.bf16.msra.mxu1 %v1936_v15  ;;  %1760 = vmatprep.subr.bf16.mxu0 %v1937_v16  ;;  %v240_v49 = vrot.slane %v238_v40, 4  ;;  %v243_v50 = vrot.slane %v241_v41, 5  ;;  %v249_v54 = vrot.slane %v247_v42, 5  ;;  %v1962_v1 = vld [vmem:[%s2423_s1 + $0x188] sm:$0xff]   ;;  %v252_v6 = vshrl.u32 %v2190_v2, 16  ;;  %v1971_v34 = vld [vmem:[%s2423_s1 + $0x118] sm:$0xff]  }
  0x16   : > { %1800 = vmatprep.subr.bf16.mxu1 %v1938_v17  ;;  %v230_v51 = vor.u32 %v229_v44, %v226_v43  ;;  %v214_v4 = vld [vmem:[%s2137_s27 + $0x28] sm:$0x11]  ;;  %v255_v7 = vshll.u32 %v2190_v2, 16  ;;  %v1551_v9 = vcombine.low %v2190_v2, %v2193_v3  ;;  %v266_v11 = vshrl.u32 %v2193_v3, 16  ;;  %v1966_v17 = vld [vmem:[%s2423_s1 + $0x1d0] sm:$0xff]   ;;  %v1972_v37 = vld [vmem:[%s2423_s1 + $0x198] sm:$0xff]  }
  0x17   : > { %v244_v53 = vor.u32 %v243_v50, %v240_v49  ;;  %v261_v10 = vshll.u32 %v214_v4, 16  ;;  %v269_v12 = vshll.u32 %v2193_v3, 16  ;;  %v275_v13 = vshll.u32 %v215_v5, 16  ;;  %v1961_v14 = vld [vmem:[%s2423_s1 + $0x108] sm:$0xff]   ;;  %v2243_v38 = vld [vmem:[%s2137_s27 + $0x40] sm:$0xff]  ;;  %v2246_v39 = vld [vmem:[%s2137_s27 + $0x50] sm:$0xff] }
  0x18   : > { %1761 = vmatpush3.bf16.msra.mxu0 %v1939_v18  ;;  %v231_v55 = vrot.slane %v230_v51, 4  ;;  %v254_v15 = vrot.slane %v252_v6, 4  ;;  %v257_v16 = vrot.slane %v255_v7, 5  ;;  %v216_v40 = vld [vmem:[%s2137_s27 + $0x48] sm:$0x11]  ;;  %v280_v42 = vshrl.u32 %v2243_v38, 16 }
  0x19   : > { %1801 = vmatpush3.bf16.msra.mxu1 %v1940_v19  ;;  %1762 = vmatprep.subr.bf16.mxu0 %v1941_v20  ;;  %v2170_v57 = vrot.slane %v244_v53, 4  ;;  %v263_v18 = vrot.slane %v261_v10, 5  ;;  %v268_v19 = vrot.slane %v266_v11, 4  ;;  %v271_v20 = vrot.slane %v269_v12, 5  ;;  %v217_v41 = vld [vmem:[%s2137_s27 + $0x58] sm:$0x11] }
  0x1a   : > { %1802 = vmatprep.subr.bf16.mxu1 %v1942_v21  ;;  %v236_v58 = vsel %vm2163_vm2, %v231_v55, %v235_v48  ;;  %v1965_v21 = vld [vmem:[%s2423_s1 + $0x150] sm:$0xff]   ;;  %v283_v43 = vshll.u32 %v2243_v38, 16  ;;  %v1554_v44 = vcombine.high %v2243_v38, %v2246_v39  ;;  %v297_v48 = vshll.u32 %v2246_v39, 16  ;;  %v1975_v53 = vld [vmem:[%s2423_s1 + $0x160] sm:$0xff]   ;;  %v1979_v4 = vld [vmem:[%s2423_s1 + $0x168] sm:$0xff]  }
  0x1b   : > { %v250_v61 = vsel %vm2163_vm2, %v2170_v57, %v249_v54  ;;  %v303_v49 = vshll.u32 %v217_v41, 16  ;;  %v282_v50 = vrot.slane %v280_v42, 4  ;;  %v1976_v54 = vld [vmem:[%s2423_s1 + $0x1e0] sm:$0xff]   ;;  %v1980_v6 = vld [vmem:[%s2423_s1 + $0x1e8] sm:$0xff]   ;;  %v1988_v41 = vld [vmem:[%s2423_s1 + $0x1b0] sm:$0xff]  }
  0x1c   : > { %1763 = vmatpush3.bf16.msra.mxu0 %v1943_v22  ;;  %v1525_v63 = vcombine.low %v236_v58, %v250_v61  ;;  %v1526_v0 = vcombine.high %v236_v58, %v250_v61  ;;  %v258_v22 = vor.u32 %v257_v16, %v254_v15  ;;  %v285_v51 = vrot.slane %v283_v43, 5  ;;  %v1982_v11 = vld [vmem:[%s2423_s1 + $0x1a8] sm:$0xff]   ;;  %v2293_v12 = vld [vmem:[%s2137_s27 + $0x60] sm:$0xff]  ;;  %v219_v15 = vld [vmem:[%s2137_s27 + $0x78] sm:$0x11] }
  0x1d   : > { %1803 = vmatpush3.bf16.msra.mxu1 %v1944_v23  ;;  %1764 = vmatprep.subr.bf16.mxu0 %v1945_v24  ;;  %v272_v23 = vor.u32 %v271_v20, %v268_v19  ;;  %v277_v24 = vrot.slane %v275_v13, 5  ;;  %v299_v58 = vrot.slane %v297_v48, 5  ;;  %v305_v61 = vrot.slane %v303_v49, 5  ;;  %v2296_v13 = vld [vmem:[%s2137_s27 + $0x70] sm:$0xff]  ;;  %v1989_v43 = vld [vmem:[%s2423_s1 + $0x178] sm:$0xff]  }
  0x1e   : > { %1804 = vmatprep.subr.bf16.mxu1 %v1946_v25  ;;  %528 = vmatprep.mubr.bf16.mxu0 %v1526_v0  ;;  %v1967_v25 = vld [vmem:[%s2423_s1 + $0x110] sm:$0xff]   ;;  %v1978_v0 = vld [vmem:[%s2423_s1 + $0x1a0] sm:$0xff]   ;;  %v308_v16 = vshrl.u32 %v2293_v12, 16  ;;  %v1555_v19 = vcombine.low %v2293_v12, %v2296_v13 }
  0x20   : > { %1765 = vmatpush3.bf16.msra.mxu0 %v1947_v26  ;;  %v2217_v26 = vrot.slane %v258_v22, 4  ;;  %v325_v22 = vshll.u32 %v2296_v13, 16 }
  0x21   : > { %1805 = vmatpush3.bf16.msra.mxu1 %v1948_v27  ;;  %1766 = vmatprep.subr.bf16.mxu0 %v1949_v28  ;;  %v1968_v27 = vld [vmem:[%s2423_s1 + $0x190] sm:$0xff]   ;;  %v2222_v28 = vrot.slane %v272_v23, 4  ;;  %v331_v23 = vshll.u32 %v219_v15, 16  ;;  %v1580_v15 = vld [vmem:[%s2137_s27 + $0x80] sm:$0xff] }
  0x22   : > { %1806 = vmatprep.subr.bf16.mxu1 %v1950_v29  ;;  %v1969_v29 = vld [vmem:[%s2423_s1 + $0x158] sm:$0xff]  }
  0x23   : > { %v278_v32 = vsel %vm2163_vm2, %v2222_v28, %v277_v24  ;;  %v310_v24 = vrot.slane %v308_v16, 4 }
  0x24   : > { %1767 = vmatpush3.bf16.msra.mxu0 %v1951_v30  ;;  %v264_v30 = vsel %vm2163_vm2, %v2217_v26, %v263_v18  ;;  %v1556_v18 = vcombine.high %v2293_v12, %v2296_v13 }
  0x25   : > { %1807 = vmatpush3.bf16.msra.mxu1 %v1952_v31  ;;  %1832 = vmatprep.subr.bf16.mxu0 %v1955_v46  ;;  %v1970_v31 = vld [vmem:[%s2423_s1 + $0x1d8] sm:$0xff]   ;;  %v1528_v35 = vcombine.high %v264_v30, %v278_v32  ;;  %v1527_v36 = vcombine.low %v264_v30, %v278_v32  ;;  %v289_v46 = vshll.u32 %v216_v40, 16  ;;  %v327_v32 = vrot.slane %v325_v22, 5 }
  0x26   : > { %1872 = vmatprep.subr.bf16.mxu1 %v1956_v47  ;;  %v294_v47 = vshrl.u32 %v2246_v39, 16  ;;  %v1650_v22 = vld [vmem:[%s2137_s27 + $0x78] sm:$0x11] }
  0x27   : > { %529 = vmatmul.mubr.bf16.vlgmr.msra.gmra.mrb[0].mxu0 %v1525_v63  ;;  %v291_v55 = vrot.slane %v289_v46, 5 }
  0x28   : > { %730 = vmatmul.mubr.bf16.vlgmr.msra.gmra.mrb[0].mxu1 %v1549_v45  ;;  %1833 = vmatpush3.bf16.msra.mxu0 %v1957_v59  ;;  %v1553_v45 = vcombine.low %v2243_v38, %v2246_v39  ;;  %v286_v59 = vor.u32 %v285_v51, %v282_v50  ;;  %v1992_v50 = vld [vmem:[%s2423_s1 + $0x1b8] sm:$0xff]   ;;  %v1614_v51 = vcombine.high %v2147_v33, %v2190_v2 }
  0x29   : > { %1873 = vmatpush3.bf16.msra.mxu1 %v1958_v56  ;;  %737 = vmatprep.mubr.bf16.mxu1 %v1552_v8  ;;  %v296_v56 = vrot.slane %v294_v47, 4  ;;  %v1981_v8 = vld [vmem:[%s2423_s1 + $0x128] sm:$0xff]   ;;  %v1991_v47 = vld [vmem:[%s2423_s1 + $0x138] sm:$0xff]  }
  0x2a   : > { %1874 = vmatprep.subr.bf16.mxu1 %v1960_v60  ;;  %1834 = vmatprep.subr.bf16.mxu0 %v1959_v62  ;;  %v1977_v62 = vld [vmem:[%s2423_s1 + $0x120] sm:$0xff]   ;;  %v2267_v63 = vrot.slane %v286_v59, 4  ;;  %v1644_v59 = vld [vmem:[%s2137_s27 + $0x48] sm:$0x11] }
  0x2b   : > { %536 = vmatprep.mubr.bf16.mxu0 %v1528_v35  ;;  %v300_v60 = vor.u32 %v299_v58, %v296_v56  ;;  %v1642_v58 = vld [vmem:[%s2137_s27 + $0x38] sm:$0x11] }
  0x2c   : > { %1835 = vmatpush3.bf16.msra.mxu0 %v1961_v14  ;;  %v292_v5 = vsel %vm2163_vm2, %v2267_v63, %v291_v55  ;;  %v218_v14 = vld [vmem:[%s2137_s27 + $0x68] sm:$0x11] }
  0x2d   : > { %1875 = vmatpush3.bf16.msra.mxu1 %v1962_v1  ;;  %1836 = vmatprep.subr.bf16.mxu0 %v1965_v21  ;;  %v2272_v1 = vrot.slane %v300_v60, 4  ;;  %v317_v20 = vshll.u32 %v218_v14, 16  ;;  %v322_v21 = vshrl.u32 %v2296_v13, 16  ;;  %v1067_v60 = vshll.u32 %v1642_v58, 16 }
  0x2e   : > { %1876 = vmatprep.subr.bf16.mxu1 %v1966_v17  ;;  %v311_v17 = vshll.u32 %v2293_v12, 16 }
  0x2f   : > { %537 = vmatmul.mubr.bf16.gmra.mrb[4].mxu0 %v1527_v36  ;;  %v306_v7 = vsel %vm2163_vm2, %v2272_v1, %v305_v61  ;;  %v319_v30 = vrot.slane %v317_v20, 5  ;;  %v333_v36 = vrot.slane %v331_v23, 5  ;;  %v1081_v61 = vshll.u32 %v1644_v59, 16  ;;  %v1652_v23 = vld [vmem:[%s2137_s27 + $0x88] sm:$0x11] }
  0x30   : > { %738 = vmatmul.mubr.bf16.gmra.mrb[4].mxu1 %v1551_v9  ;;  %1837 = vmatpush3.bf16.msra.mxu0 %v1967_v25  ;;  %v1530_v9 = vcombine.high %v292_v5, %v306_v7  ;;  %v1529_v10 = vcombine.low %v292_v5, %v306_v7  ;;  %v313_v25 = vrot.slane %v311_v17, 5  ;;  %v1613_v20 = vcombine.low %v2147_v33, %v2190_v2 }
  0x31   : > { %1877 = vmatpush3.bf16.msra.mxu1 %v1968_v27  ;;  %1838 = vmatprep.subr.bf16.mxu0 %v1969_v29  ;;  %v1985_v27 = vld [vmem:[%s2423_s1 + $0x170] sm:$0xff]   ;;  %v1123_v2 = vshll.u32 %v1650_v22, 16 }
  0x32   : > { %1878 = vmatprep.subr.bf16.mxu1 %v1970_v31  ;;  %745 = vmatprep.mubr.bf16.mxu1 %v1554_v44  ;;  %v1986_v29 = vld [vmem:[%s2423_s1 + $0x1f0] sm:$0xff]   ;;  %v324_v31 = vrot.slane %v322_v21, 4 }
  0x33   : > { %544 = vmatprep.mubr.bf16.mxu0 %v1530_v9  ;;  %v1083_v9 = vrot.slane %v1081_v61, 5 }
  0x34   : > { %1839 = vmatpush3.bf16.msra.mxu0 %v1971_v34  ;;  %v314_v34 = vor.u32 %v313_v25, %v310_v24  ;;  %v328_v35 = vor.u32 %v327_v32, %v324_v31  ;;  %v1128_v24 = vshrl.u32 %v1580_v15, 16  ;;  %v1131_v25 = vshll.u32 %v1580_v15, 16 }
  0x35   : > { %1879 = vmatpush3.bf16.msra.mxu1 %v1972_v37  ;;  %1840 = vmatprep.subr.bf16.mxu0 %v1975_v53  ;;  %v1987_v37 = vld [vmem:[%s2423_s1 + $0x130] sm:$0xff]   ;;  %v1638_v53 = vld [vmem:[%s2137_s27 + $0x18] sm:$0x11] }
  0x36   : > { %1880 = vmatprep.subr.bf16.mxu1 %v1976_v54  ;;  %v315_v40 = vrot.slane %v314_v34, 4  ;;  %v2320_v42 = vrot.slane %v328_v35, 4  ;;  %v1640_v54 = vld [vmem:[%s2137_s27 + $0x28] sm:$0x11]  ;;  %v1039_v55 = vshll.u32 %v1638_v53, 16  ;;  %v1615_v34 = vcombine.low %v2193_v3, %v2243_v38 }
  0x37   : > { %545 = vmatmul.mubr.bf16.gmra.mrb[8].mxu0 %v1529_v10  ;;  %v1053_v56 = vshll.u32 %v1640_v54, 16  ;;  %v1125_v35 = vrot.slane %v1123_v2, 5 }
  0x38   : > { %746 = vmatmul.mubr.bf16.gmra.mrb[8].mxu1 %v1553_v45  ;;  %1841 = vmatpush3.bf16.msra.mxu0 %v1977_v62  ;;  %v320_v44 = vsel %vm2163_vm2, %v315_v40, %v319_v30  ;;  %v1990_v45 = vld [vmem:[%s2423_s1 + $0x1f8] sm:$0xff]   ;;  %v334_v46 = vsel %vm2163_vm2, %v2320_v42, %v333_v36 }
  0x39   : > { %1881 = vmatpush3.bf16.msra.mxu1 %v1978_v0  ;;  %1842 = vmatprep.subr.bf16.mxu0 %v1979_v4  ;;  %v1532_v48 = vcombine.high %v320_v44, %v334_v46  ;;  %v1531_v49 = vcombine.low %v320_v44, %v334_v46  ;;  %v1646_v62 = vld [vmem:[%s2137_s27 + $0x58] sm:$0x11]  ;;  %v1648_v0 = vld [vmem:[%s2137_s27 + $0x68] sm:$0x11]  ;;  %v1041_v4 = vrot.slane %v1039_v55, 5  ;;  %v1055_v5 = vrot.slane %v1053_v56, 5 }
  0x3a   : > { %1882 = vmatprep.subr.bf16.mxu1 %v1980_v6  ;;  %753 = vmatprep.mubr.bf16.mxu1 %v1556_v18  ;;  %v1095_v6 = vshll.u32 %v1646_v62, 16  ;;  %v1109_v7 = vshll.u32 %v1648_v0, 16  ;;  %v1619_v46 = vcombine.low %v2296_v13, %v1580_v15 }
  0x3b   : > { %552 = vmatprep.mubr.bf16.mxu0 %v1532_v48  ;;  %v1042_v10 = vsel %vm2163_vm2, %v2170_v57, %v1041_v4 }
  0x3c   : > { %1843 = vmatpush3.bf16.msra.mxu0 %v1981_v8  ;;  %v1069_v8 = vrot.slane %v1067_v60, 5  ;;  %v1097_v14 = vrot.slane %v1095_v6, 5  ;;  %v1111_v21 = vrot.slane %v1109_v7, 5 }
  0x3d   : > { %1883 = vmatpush3.bf16.msra.mxu1 %v1982_v11  ;;  %1844 = vmatprep.subr.bf16.mxu0 %v1985_v27  ;;  %v1056_v11 = vsel %vm2163_vm2, %v2217_v26, %v1055_v5  ;;  %v1616_v26 = vcombine.high %v2193_v3, %v2243_v38  ;;  %v1133_v27 = vrot.slane %v1131_v25, 5  ;;  %v1617_v3 = vcombine.low %v2246_v39, %v2293_v12 }
  0x3e   : > { %1884 = vmatprep.subr.bf16.mxu1 %v1986_v29  ;;  %v1685_v16 = vcombine.low %v1042_v10, %v1056_v11  ;;  %v1686_v17 = vcombine.high %v1042_v10, %v1056_v11  ;;  %v1070_v18 = vsel %vm2163_vm2, %v2222_v28, %v1069_v8  ;;  %v1098_v28 = vsel %vm2163_vm2, %v2272_v1, %v1097_v14 }
  0x3f   : > { %553 = vmatmul.mubr.bf16.gmra.mrb[12].mxu0 %v1531_v49  ;;  %v1112_v33 = vsel %vm2163_vm2, %v315_v40, %v1111_v21  ;;  %v1137_v29 = vshll.u32 %v1652_v23, 16  ;;  %v1618_v1 = vcombine.high %v2246_v39, %v2293_v12  ;;  %v1126_v40 = vsel %vm2163_vm2, %v2320_v42, %v1125_v35 }
  0x40   : > { %754 = vmatmul.mubr.bf16.gmra.mrb[12].mxu1 %v1555_v19  ;;  %1845 = vmatpush3.bf16.msra.mxu0 %v1987_v37  ;;  %v1084_v19 = vsel %vm2163_vm2, %v2267_v63, %v1083_v9  ;;  %v1130_v63 = vrot.slane %v1128_v24, 4  ;;  %v1690_v32 = vcombine.high %v1098_v28, %v1112_v33  ;;  %v1620_v38 = vcombine.high %v2296_v13, %v1580_v15 }
  0x41   : > { %1885 = vmatpush3.bf16.msra.mxu1 %v1988_v41  ;;  %1846 = vmatprep.subr.bf16.mxu0 %v1989_v43  ;;  %v1688_v57 = vcombine.high %v1070_v18, %v1084_v19  ;;  %v1687_v30 = vcombine.low %v1070_v18, %v1084_v19  ;;  %v1139_v37 = vrot.slane %v1137_v29, 5  ;;  %v1689_v43 = vcombine.low %v1098_v28, %v1112_v33 }
  0x42   : > { %1886 = vmatprep.subr.bf16.mxu1 %v1990_v45  ;;  %972 = vmatprep.mubr.bf16.mxu0 %v1614_v51  ;;  %v1134_v31 = vor.u32 %v1133_v27, %v1130_v63 }
  0x43   : > { %1334 = vmatprep.mubr.bf16.mxu1 %v1686_v17 }
  0x44   : > { %1847 = vmatpush3.bf16.msra.mxu0 %v1991_v47  ;;  %v1135_v36 = vrot.slane %v1134_v31, 4 }
  0x45   : > { %1887 = vmatpush3.bf16.msra.mxu1 %v1992_v50 }
  0x46   : > { %v1140_v41 = vsel %vm2163_vm2, %v1135_v36, %v1139_v37 }
  0x47   : > { %973 = vmatmul.mubr.bf16.vlgmr.msra.gmra.mrb[16].mxu0 %v1613_v20  ;;  %v1692_v44 = vcombine.high %v1126_v40, %v1140_v41  ;;  %v1691_v45 = vcombine.low %v1126_v40, %v1140_v41 }
  0x48   : > { %1335 = vmatmul.mubr.bf16.vlgmr.msra.gmra.mrb[16].mxu1 %v1685_v16  ;;  %980 = vmatprep.mubr.bf16.mxu0 %v1616_v26 }
  0x49   : > { %1342 = vmatprep.mubr.bf16.mxu1 %v1688_v57 }
  0x4f   : > { %981 = vmatmul.mubr.bf16.gmra.mrb[20].mxu0 %v1615_v34 }
  0x50   : > { %1343 = vmatmul.mubr.bf16.gmra.mrb[20].mxu1 %v1687_v30  ;;  %988 = vmatprep.mubr.bf16.mxu0 %v1618_v1 }
  0x51   : > { %1350 = vmatprep.mubr.bf16.mxu1 %v1690_v32 }
  0x57   : > { %989 = vmatmul.mubr.bf16.gmra.mrb[24].mxu0 %v1617_v3 }
  0x58   : > { %1351 = vmatmul.mubr.bf16.gmra.mrb[24].mxu1 %v1689_v43  ;;  %996 = vmatprep.mubr.bf16.mxu0 %v1620_v38 }
  0x59   : > { %1358 = vmatprep.mubr.bf16.mxu1 %v1692_v44 }
  0x5f   : > { %997 = vmatmul.mubr.bf16.gmra.mrb[28].mxu0 %v1619_v46 }
  0x60   : > { %1359 = vmatmul.mubr.bf16.gmra.mrb[28].mxu1 %v1691_v45 }
  0xfa   : > { %v1768_v51 = vpop.f32.mrb[0].mxu0 }
  0xfb   : > { %v1808_v42 = vpop.f32.mrb[0].mxu1  ;;  %v1769_v53 = vpop.f32.mrb[1].mxu0 }
  0xfc   : > { %v1809_v52 = vpop.f32.mrb[1].mxu1  ;;  %v1770_v12 = vadd.f32 %v1769_v53, %v1768_v51  ;;  %v1771_v54 = vpop.f32.mrb[2].mxu0 }
  0xfd   : > { %v1810_v47 = vadd.f32 %v1809_v52, %v1808_v42  ;;  %v1811_v48 = vpop.f32.mrb[2].mxu1  ;;  %v1772_v56 = vpop.f32.mrb[3].mxu0 }
  0xfe   : > { %v1812_v49 = vpop.f32.mrb[3].mxu1  ;;  %v1773_v61 = vadd.f32 %v1772_v56, %v1771_v54 }
  0xff   : > { %v1813_v50 = vadd.f32 %v1812_v49, %v1811_v48  ;;  %v732_v60 = vadd.f32 %v1810_v47, %v1770_v12 }
 0x101   : > { %v735_v0 = vadd.f32 %v1813_v50, %v1773_v61 }
 0x102   : > { %v1774_v4 = vpop.f32.mrb[4].mxu0 }
 0x103   : > { %v1814_v39 = vpop.f32.mrb[4].mxu1  ;;  %v1775_v5 = vpop.f32.mrb[5].mxu0 }
 0x104   : > { %v1815_v55 = vpop.f32.mrb[5].mxu1  ;;  %v1776_v6 = vadd.f32 %v1775_v5, %v1774_v4  ;;  %v1777_v7 = vpop.f32.mrb[6].mxu0 }
 0x105   : > { %v1816_v58 = vadd.f32 %v1815_v55, %v1814_v39  ;;  %v1817_v59 = vpop.f32.mrb[6].mxu1  ;;  %v1778_v9 = vpop.f32.mrb[7].mxu0  ;;  %v2395_v39 = vld [vmem:[%s2424_s2] ss:$0 sm:$0xff] }
 0x106   : > { %v1818_v13 = vpop.f32.mrb[7].mxu1  ;;  %v1779_v14 = vadd.f32 %v1778_v9, %v1777_v7 }
 0x107   : > { %v1819_v62 = vadd.f32 %v1818_v13, %v1817_v59  ;;  %v740_v11 = vadd.f32 %v1816_v58, %v1776_v6 }
 0x109   : > { %v743_v18 = vadd.f32 %v1819_v62, %v1779_v14 }
 0x10a   : > { %v1780_v20 = vpop.f32.mrb[8].mxu0 }
 0x10b   : > { %v1820_v8 = vpop.f32.mrb[8].mxu1  ;;  %v1781_v57 = vpop.f32.mrb[9].mxu0 }
 0x10c   : > { %v1821_v10 = vpop.f32.mrb[9].mxu1  ;;  %v1782_v21 = vadd.f32 %v1781_v57, %v1780_v20  ;;  %v1783_v26 = vpop.f32.mrb[10].mxu0 }
 0x10d   : > { %v1822_v15 = vadd.f32 %v1821_v10, %v1820_v8  ;;  %v1823_v16 = vpop.f32.mrb[10].mxu1  ;;  %v1784_v23 = vpop.f32.mrb[11].mxu0 }
 0x10e   : > { %v1824_v17 = vpop.f32.mrb[11].mxu1  ;;  %v1785_v28 = vadd.f32 %v1784_v23, %v1783_v26 }
 0x10f   : > { %v1825_v19 = vadd.f32 %v1824_v17, %v1823_v16  ;;  %v2384_v25 = vadd.f32 %v1822_v15, %v1782_v21 }
 0x111   : > { %v2386_v27 = vadd.f32 %v1825_v19, %v1785_v28 }
 0x112   : > { %v1786_v30 = vpop.f32.mrb[12].mxu0 }
 0x113   : > { %v1826_v22 = vpop.f32.mrb[12].mxu1  ;;  %v1787_v31 = vpop.f32.mrb[13].mxu0 }
 0x114   : > { %v1827_v24 = vpop.f32.mrb[13].mxu1  ;;  %v1788_v32 = vadd.f32 %v1787_v31, %v1786_v30  ;;  %v1789_v34 = vpop.f32.mrb[14].mxu0 }
 0x115   : > { %v1828_v63 = vadd.f32 %v1827_v24, %v1826_v22  ;;  %v1829_v33 = vpop.f32.mrb[14].mxu1  ;;  %v1790_v35 = vpop.f32.mrb[15].mxu0 }
 0x116   : > { %v1830_v2 = vpop.f32.mrb[15].mxu1  ;;  %v1791_v37 = vadd.f32 %v1790_v35, %v1789_v34 }
 0x117   : > { %v1831_v29 = vadd.f32 %v1830_v2, %v1829_v33  ;;  %v2388_v36 = vadd.f32 %v1828_v63, %v1788_v32 }
 0x119   : > { %v2390_v1 = vadd.f32 %v1831_v29, %v1791_v37 }
 0x11a   : > { %v1848_v43 = vpop.f32.mrb[16].mxu0 }
 0x11b   : > { %v1888_v40 = vpop.f32.mrb[16].mxu1  ;;  %v1849_v38 = vpop.f32.mrb[17].mxu0 }
 0x11c   : > { %v1889_v41 = vpop.f32.mrb[17].mxu1  ;;  %v1850_v46 = vadd.f32 %v1849_v38, %v1848_v43  ;;  %v1851_v42 = vpop.f32.mrb[18].mxu0 }
 0x11d   : > { %v1890_v44 = vadd.f32 %v1889_v41, %v1888_v40  ;;  %v1891_v3 = vpop.f32.mrb[18].mxu1  ;;  %v1852_v47 = vpop.f32.mrb[19].mxu0 }
 0x11e   : > { %v1892_v45 = vpop.f32.mrb[19].mxu1  ;;  %v1005_v48 = vadd.f32 %v1850_v46, %v732_v60  ;;  %v1853_v49 = vadd.f32 %v1852_v47, %v1851_v42 }
 0x11f   : > { %v1893_v52 = vadd.f32 %v1892_v45, %v1891_v3 }
 0x120   : > { %v1367_v50 = vadd.f32 %v1890_v44, %v1005_v48  ;;  %v1006_v51 = vadd.f32 %v1853_v49, %v735_v0 }
 0x122   : > { %v1368_v54 = vadd.f32 %v1893_v52, %v1006_v51  ;;  %v1854_v55 = vpop.f32.mrb[20].mxu0  ;;  %v1382_v13 = vadd.f32 %v2395_v39, %v1367_v50 }
 0x123   : > { %v1894_v53 = vpop.f32.mrb[20].mxu1  ;;  %v1855_v59 = vpop.f32.mrb[21].mxu0 }
 0x124   : > { %v1895_v12 = vpop.f32.mrb[21].mxu1  ;;  %v1383_v60 = vadd.f32 %v2395_v39, %v1368_v54  ;;  %v1856_v62 = vadd.f32 %v1855_v59, %v1854_v55  ;;  %v1857_v0 = vpop.f32.mrb[22].mxu0 }
 0x125   : > { %v1896_v56 = vadd.f32 %v1895_v12, %v1894_v53  ;;  %v1897_v58 = vpop.f32.mrb[22].mxu1  ;;  %v1858_v5 = vpop.f32.mrb[23].mxu0 }
 0x126   : > { %v1898_v61 = vpop.f32.mrb[23].mxu1  ;;  %v1732_v6 = vpack.c.bf16 %v1383_v60, %v1382_v13  ;;  %v1007_v7 = vadd.f32 %v1856_v62, %v740_v11  ;;  %v1859_v8 = vadd.f32 %v1858_v5, %v1857_v0 }
 0x127   : > { %v1899_v4 = vadd.f32 %v1898_v61, %v1897_v58 }
 0x128   : > { %1733 = vst [vmem:[%s2403_s28] sm:$0xff] %v1732_v6   ;;  %v1369_v9 = vadd.f32 %v1896_v56, %v1007_v7  ;;  %v1008_v10 = vadd.f32 %v1859_v8, %v743_v18 }
 0x12a   : > { %v1370_v16 = vadd.f32 %v1899_v4, %v1008_v10  ;;  %v1860_v17 = vpop.f32.mrb[24].mxu0  ;;  %v1384_v26 = vadd.f32 %v2395_v39, %v1369_v9 }
 0x12b   : > { %v1900_v14 = vpop.f32.mrb[24].mxu1  ;;  %v1861_v57 = vpop.f32.mrb[25].mxu0 }
 0x12c   : > { %v1901_v15 = vpop.f32.mrb[25].mxu1  ;;  %v1385_v22 = vadd.f32 %v2395_v39, %v1370_v16  ;;  %v1862_v23 = vadd.f32 %v1861_v57, %v1860_v17  ;;  %v1863_v24 = vpop.f32.mrb[26].mxu0 }
 0x12d   : > { %v1902_v19 = vadd.f32 %v1901_v15, %v1900_v14  ;;  %v1903_v20 = vpop.f32.mrb[26].mxu1  ;;  %v1864_v28 = vpop.f32.mrb[27].mxu0 }
 0x12e   : > { %v1904_v21 = vpop.f32.mrb[27].mxu1  ;;  %v1737_v63 = vpack.c.bf16 %v1385_v22, %v1384_v26  ;;  %v1009_v18 = vadd.f32 %v1862_v23, %v2384_v25  ;;  %v1865_v33 = vadd.f32 %v1864_v28, %v1863_v24 }
 0x12f   : > { %v1905_v11 = vadd.f32 %v1904_v21, %v1903_v20 }
 0x130   : > { %1749 = vst [vmem:[%s2403_s28 + $0x8] sm:$0xff] %v1737_v63   ;;  %v1371_v2 = vadd.f32 %v1902_v19, %v1009_v18  ;;  %v1010_v29 = vadd.f32 %v1865_v33, %v2386_v27 }
 0x132   : > { %v1372_v32 = vadd.f32 %v1905_v11, %v1010_v29  ;;  %v1866_v34 = vpop.f32.mrb[28].mxu0  ;;  %v1386_v43 = vadd.f32 %v2395_v39, %v1371_v2 }
 0x133   : > { %v1906_v30 = vpop.f32.mrb[28].mxu1  ;;  %v1867_v40 = vpop.f32.mrb[29].mxu0 }
 0x134   : > { %v1907_v31 = vpop.f32.mrb[29].mxu1  ;;  %v1387_v44 = vadd.f32 %v2395_v39, %v1372_v32  ;;  %v1868_v25 = vadd.f32 %v1867_v40, %v1866_v34  ;;  %v1869_v3 = vpop.f32.mrb[30].mxu0 }
 0x135   : > { %v1908_v35 = vadd.f32 %v1907_v31, %v1906_v30  ;;  %v1909_v37 = vpop.f32.mrb[30].mxu1  ;;  %v1870_v45 = vpop.f32.mrb[31].mxu0 }
 0x136   : > { %v1910_v41 = vpop.f32.mrb[31].mxu1  ;;  %v1742_v46 = vpack.c.bf16 %v1387_v44, %v1386_v43  ;;  %v1011_v27 = vadd.f32 %v1868_v25, %v2388_v36  ;;  %v1871_v42 = vadd.f32 %v1870_v45, %v1869_v3 }
 0x137   : > { %v1911_v38 = vadd.f32 %v1910_v41, %v1909_v37 }
 0x138   : > { %1750 = vst [vmem:[%s2403_s28 + $0x10] sm:$0xff] %v1742_v46   ;;  %v1373_v52 = vadd.f32 %v1908_v35, %v1011_v27  ;;  %v1012_v47 = vadd.f32 %v1871_v42, %v2390_v1 }
 0x13a   : > { %v1374_v48 = vadd.f32 %v1911_v38, %v1012_v47  ;;  %v1388_v49 = vadd.f32 %v2395_v39, %v1373_v52 }
 0x13c   : > { %v1389_v50 = vadd.f32 %v2395_v39, %v1374_v48 }
 0x13e   : > { %v1747_v51 = vpack.c.bf16 %v1389_v50, %v1388_v49 }
 0x140   : > { %1751 = vst [vmem:[%s2403_s28 + $0x18] sm:$0xff] %v1747_v51  }
 0x141 PF: > { %s13_s12 = sadd.s32 1, %s2007_s12  }
 0x142   : > { %p10_p4 = scmp.ge.s32.totalorder %s13_s12, 4  }
 0x144   :  { %12 = sbr.rel (!%p10_p4) target bundleno = 1 (0x1), region = 66 }

</bundles_post_ra>
